<compile_context>
chip_gen: v7x
topology: tpu7x:2x2x1
jax: 0.10.0
libtpu: 0.0.40
codegen_flags: <defaults>
</compile_context>

<pallas_src>
import functools

import jax
import jax.numpy as jnp
from jax.experimental import pallas as pl
from jax.experimental.pallas import tpu as pltpu

_LANE = 128
_MAX_TILE_N = 32768            # lanes per grid step (upper cap)
_TARGET_STEP_BYTES = 4 << 20   # ~4 MiB of HBM traffic per grid step


def _dice_partials_kernel(l0_ref, l1_ref, t_ref,
                          inter_ref, psum_ref, tsum_ref,
                          *, n_chunks: int, chunk: int):
    """Accumulate lane-shaped partial sums of p1*t, p1 and t for one tile."""
    k = pl.program_id(1)

    @pl.when(k == 0)
    def _init():
        inter_ref[...] = jnp.zeros_like(inter_ref)
        psum_ref[...] = jnp.zeros_like(psum_ref)
        tsum_ref[...] = jnp.zeros_like(tsum_ref)

    b = l0_ref.shape[0]
    zero = jnp.zeros((b, chunk), jnp.float32)

    def body(c, carry):
        ip, pp, tp = carry
        off = pl.multiple_of(c * chunk, chunk)
        sl = pl.ds(off, chunk)
        l0 = l0_ref[:, sl].astype(jnp.float32)
        l1 = l1_ref[:, sl].astype(jnp.float32)
        tt = t_ref[:, sl].astype(jnp.float32)
        # 2-class softmax(., dim=1)[:, 1] == sigmoid(l1 - l0); use the tanh
        # identity: one EUP push, no f32 divide on the VPU.
        p1 = 0.5 * (jnp.tanh(0.5 * (l1 - l0)) + 1.0)
        return ip + p1 * tt, pp + p1, tp + tt

    ip, pp, tp = jax.lax.fori_loop(
        0, n_chunks, body, (zero, zero, zero),
        unroll=n_chunks if n_chunks <= 8 else 2)

    def fold(x):  # [B, chunk] -> [B, _LANE], vreg-aligned lane-block adds
        r = x[:, :_LANE]
        for c in range(1, chunk // _LANE):
            r = r + x[:, c * _LANE:(c + 1) * _LANE]
        return r

    inter_ref[...] += fold(ip)
    psum_ref[...] += fold(pp)
    tsum_ref[...] += fold(tp)


def dice_loss(logits: jax.Array, targets: jax.Array,
              smooth: float = 1.0) -> jax.Array:
    """logits: [B, 2, H, W]; targets: [B, H, W] with 0/1 labels. Scalar f32."""
    B, C, H, W = logits.shape
    assert C == 2, "DiceLoss expects 2-class logits [B, 2, H, W]"
    N = H * W

    logits3 = logits.reshape(B, 2, N)          # free, metadata-only
    t = targets.reshape(B, N)
    if t.dtype == jnp.bool_:
        t = t.astype(jnp.int8)                 # avoid packed-bool blocks
    elif t.dtype.itemsize > 4:
        t = t.astype(jnp.int32 if jnp.issubdtype(t.dtype, jnp.integer)
                     else jnp.float32)

    # ---- tile sizing by bytes-per-grid-step (keeps the kernel DMA-bound) ---
    per_lane_bytes = B * (2 * logits.dtype.itemsize + t.dtype.itemsize)
    tile_n = max(_LANE, min(_MAX_TILE_N,
                            _TARGET_STEP_BYTES // max(per_lane_bytes, 1)))
    tile_n = max(_LANE, 1 << (int(tile_n).bit_length() - 1))   # pow2: divides
    n_ceil = -(-N // _LANE) * _LANE                            # typical H*W
    tile_n = min(tile_n, n_ceil)

    n_blk = -(-N // tile_n)
    # Two-TensorCore split of the N range (leading "parallel" axis) — ~2x on
    # v7x, neutral on single-TC v5e/v6e.
    if n_blk >= 2:
        if n_blk % 2 and (N % tile_n != 0):
            n_blk += 1          # pad already needed; one extra all-pad block
        n_split = 2 if n_blk % 2 == 0 else 1
    else:
        n_split = 1
    n_pad = n_blk * tile_n
    blk_per_split = n_blk // n_split

    # Pad only up to tile_n granularity (no copy at all for aligned H*W).
    # Padded logits are exactly 0 -> p1 == 0.5 there; corrected analytically
    # below, so no per-element masking is needed in the kernel.
    if n_pad != N:
        logits3 = jnp.pad(logits3, ((0, 0), (0, 0), (0, n_pad - N)))
        t = jnp.pad(t, ((0, 0), (0, n_pad - N)))

    # Lane-dense channel layout: channel 0 in columns [0, n_pad), channel 1
    # in [n_pad, 2*n_pad) of the same contiguous buffer.
    logits_flat = logits3.reshape(B, 2 * n_pad)

    chunk = next(c for c in (512, 384, 256, 128) if tile_n % c == 0)
    n_chunks = tile_n // chunk
    blocks_per_channel = n_pad // tile_n

    kernel = functools.partial(_dice_partials_kernel,
                               n_chunks=n_chunks, chunk=chunk)

    cost = pl.CostEstimate(
        flops=10 * B * n_pad,
        transcendentals=B * n_pad,
        bytes_accessed=(B * 2 * n_pad * logits.dtype.itemsize
                        + B * n_pad * t.dtype.itemsize
                        + 3 * n_split * B * _LANE * 4),
    )

    inter_p, p_p, t_p = pl.pallas_call(
        kernel,
        out_shape=[jax.ShapeDtypeStruct((n_split, B, _LANE), jnp.float32)] * 3,
        grid=(n_split, blk_per_split),
        in_specs=[
            pl.BlockSpec((B, tile_n),
                         lambda s, k: (0, s * blk_per_split + k)),
            pl.BlockSpec((B, tile_n),
                         lambda s, k: (0, blocks_per_channel
                                       + s * blk_per_split + k)),
            pl.BlockSpec((B, tile_n),
                         lambda s, k: (0, s * blk_per_split + k)),
        ],
        out_specs=[pl.BlockSpec((None, B, _LANE), lambda s, k: (s, 0, 0))] * 3,
        compiler_params=pltpu.CompilerParams(
            dimension_semantics=("parallel", "arbitrary")),
        cost_estimate=cost,
    )(logits_flat, logits_flat, t)

    # Tiny finalize in the wrapper (a few hundred bytes of data).
    inter = jnp.sum(inter_p, axis=(0, 2))                       # [B]
    psum = jnp.sum(p_p, axis=(0, 2)) - 0.5 * (n_pad - N)        # pad fix
    tsum = jnp.sum(t_p, axis=(0, 2))                            # [B]
    dice = (2.0 * inter + smooth) / (psum + tsum + smooth)
    return 1.0 - jnp.mean(dice)


def _dice_loss_ref(logits, targets, smooth=1.0):
    B = logits.shape[0]
    probs = jax.nn.softmax(logits.astype(jnp.float32), axis=1)[:, 1]
    probs_flat = probs.reshape(B, -1)
    targets_flat = targets.reshape(B, -1).astype(jnp.float32)
    intersection = jnp.sum(probs_flat * targets_flat, axis=1)
    union = jnp.sum(probs_flat, axis=1) + jnp.sum(targets_flat, axis=1)
    dice = (2.0 * intersection + smooth) / (union + smooth)
    return 1.0 - jnp.mean(dice)


if __name__ == "__main__":
    key = jax.random.PRNGKey(0)
    k1, k2 = jax.random.split(key)

    B, C, H, W = 2, 2, 16, 16
    logits = jax.random.normal(k1, (B, C, H, W), dtype=jnp.float32)
    targets = jax.random.bernoulli(k2, 0.5, (B, H, W)).astype(jnp.int32)

    loss = jax.block_until_ready(dice_loss(logits, targets, smooth=1.0))
    ref = _dice_loss_ref(logits, targets, smooth=1.0)
    assert jnp.allclose(loss, ref, atol=1e-5, rtol=1e-5), (loss, ref)

    print("KERNEL_OK")
</pallas_src>

<mosaic_0001>
module attributes {stable_mosaic.version = 11 : i64} {
  func.func @_dice_partials_kernel(%arg0: i32, %arg1: i32, %arg2: memref<2x256xf32, #tpu.memory_space<vmem>>, %arg3: memref<2x256xf32, #tpu.memory_space<vmem>>, %arg4: memref<2x256xi32, #tpu.memory_space<vmem>>, %arg5: memref<1x2x128xf32, #tpu.memory_space<vmem>>, %arg6: memref<1x2x128xf32, #tpu.memory_space<vmem>>, %arg7: memref<1x2x128xf32, #tpu.memory_space<vmem>>) attributes {dimension_semantics = [#tpu.dimension_semantics<parallel>, #tpu.dimension_semantics<arbitrary>], iteration_bounds = array<i64: 1, 1>, scalar_prefetch = 0 : i64, scratch_operands = 0 : i64, tpu.core_type = #tpu.core_type<tc>, window_params = [{transform_indices = @transform_0, window_bounds = array<i64: 2, 256>}, {transform_indices = @transform_1, window_bounds = array<i64: 2, 256>}, {transform_indices = @transform_2, window_bounds = array<i64: 2, 256>}, {transform_indices = @transform_3, window_bounds = array<i64: 1, 2, 128>}, {transform_indices = @transform_4, window_bounds = array<i64: 1, 2, 128>}, {transform_indices = @transform_5, window_bounds = array<i64: 1, 2, 128>}]} {
    %c0_i32 = arith.constant 0 : i32
    %0 = arith.cmpi eq, %arg1, %c0_i32 : i32
    %1 = arith.extui %0 : i1 to i32
    %c0_i32_0 = arith.constant 0 : i32
    %2 = arith.cmpi ne, %1, %c0_i32_0 : i32
    scf.if %2 {
      %cst_25 = arith.constant 0.000000e+00 : f32
      %52 = vector.broadcast %cst_25 : f32 to vector<2x128xf32>
      %c0_26 = arith.constant 0 : index
      %c0_27 = arith.constant 0 : index
      %c0_28 = arith.constant 0 : index
      %53 = vector.load %arg5[%c0_26, %c0_27, %c0_28] : memref<1x2x128xf32, #tpu.memory_space<vmem>>, vector<1x2x128xf32>
      %54 = vector.shape_cast %53 : vector<1x2x128xf32> to vector<2x128xf32>
      %55 = vector.shape_cast %52 : vector<2x128xf32> to vector<1x2x128xf32>
      tpu.vector_store %arg5[%c0_26, %c0_27, %c0_28], %55 {strides = array<i32>} : memref<1x2x128xf32, #tpu.memory_space<vmem>>, vector<1x2x128xf32>,
      %cst_29 = arith.constant 0.000000e+00 : f32
      %56 = vector.broadcast %cst_29 : f32 to vector<2x128xf32>
      %c0_30 = arith.constant 0 : index
      %c0_31 = arith.constant 0 : index
      %c0_32 = arith.constant 0 : index
      %57 = vector.load %arg6[%c0_30, %c0_31, %c0_32] : memref<1x2x128xf32, #tpu.memory_space<vmem>>, vector<1x2x128xf32>
      %58 = vector.shape_cast %57 : vector<1x2x128xf32> to vector<2x128xf32>
      %59 = vector.shape_cast %56 : vector<2x128xf32> to vector<1x2x128xf32>
      tpu.vector_store %arg6[%c0_30, %c0_31, %c0_32], %59 {strides = array<i32>} : memref<1x2x128xf32, #tpu.memory_space<vmem>>, vector<1x2x128xf32>,
      %cst_33 = arith.constant 0.000000e+00 : f32
      %60 = vector.broadcast %cst_33 : f32 to vector<2x128xf32>
      %c0_34 = arith.constant 0 : index
      %c0_35 = arith.constant 0 : index
      %c0_36 = arith.constant 0 : index
      %61 = vector.load %arg7[%c0_34, %c0_35, %c0_36] : memref<1x2x128xf32, #tpu.memory_space<vmem>>, vector<1x2x128xf32>
      %62 = vector.shape_cast %61 : vector<1x2x128xf32> to vector<2x128xf32>
      %63 = vector.shape_cast %60 : vector<2x128xf32> to vector<1x2x128xf32>
      tpu.vector_store %arg7[%c0_34, %c0_35, %c0_36], %63 {strides = array<i32>} : memref<1x2x128xf32, #tpu.memory_space<vmem>>, vector<1x2x128xf32>,
    } else {
    }
    %cst = arith.constant 0.000000e+00 : f32
    %3 = vector.broadcast %cst : f32 to vector<2x256xf32>
    %c0_i32_1 = arith.constant 0 : i32
    %c256_i32 = arith.constant 256 : i32
    %4 = arith.muli %c0_i32_1, %c256_i32 : i32
    %5 = tpu.assume_multiple %4, 256 : i32
    %c0 = arith.constant 0 : index
    %6 = arith.index_cast %5 : i32 to index
    %7 = vector.load %arg2[%c0, %6] : memref<2x256xf32, #tpu.memory_space<vmem>>, vector<2x256xf32>
    %c0_2 = arith.constant 0 : index
    %8 = arith.index_cast %5 : i32 to index
    %9 = vector.load %arg3[%c0_2, %8] : memref<2x256xf32, #tpu.memory_space<vmem>>, vector<2x256xf32>
    %c0_3 = arith.constant 0 : index
    %10 = arith.index_cast %5 : i32 to index
    %11 = vector.load %arg4[%c0_3, %10] : memref<2x256xi32, #tpu.memory_space<vmem>>, vector<2x256xi32>
    %12 = arith.sitofp %11 : vector<2x256xi32> to vector<2x256xf32>
    %13 = arith.subf %9, %7 : vector<2x256xf32>
    %cst_4 = arith.constant 5.000000e-01 : f32
    %14 = vector.broadcast %cst_4 : f32 to vector<2x256xf32>
    %15 = arith.mulf %14, %13 : vector<2x256xf32>
    %16 = math.tanh %15 : vector<2x256xf32>
    %cst_5 = arith.constant 1.000000e+00 : f32
    %17 = vector.broadcast %cst_5 : f32 to vector<2x256xf32>
    %18 = arith.addf %16, %17 : vector<2x256xf32>
    %cst_6 = arith.constant 5.000000e-01 : f32
    %19 = vector.broadcast %cst_6 : f32 to vector<2x256xf32>
    %20 = arith.mulf %19, %18 : vector<2x256xf32>
    %21 = arith.mulf %20, %12 : vector<2x256xf32>
    %22 = arith.addf %3, %21 : vector<2x256xf32>
    %23 = arith.addf %3, %20 : vector<2x256xf32>
    %24 = arith.addf %3, %12 : vector<2x256xf32>
    %c1_i32 = arith.constant 1 : i32
    %c0_7 = arith.constant 0 : index
    %c0_8 = arith.constant 0 : index
    %c0_9 = arith.constant 0 : index
    %25 = vector.load %arg5[%c0_7, %c0_8, %c0_9] : memref<1x2x128xf32, #tpu.memory_space<vmem>>, vector<1x2x128xf32>
    %26 = vector.shape_cast %25 : vector<1x2x128xf32> to vector<2x128xf32>
    %27 = vector.extract_strided_slice %22 {offsets = [0, 0], sizes = [2, 128], strides = [1, 1]} : vector<2x256xf32> to vector<2x128xf32>
    %28 = vector.extract_strided_slice %22 {offsets = [0, 128], sizes = [2, 128], strides = [1, 1]} : vector<2x256xf32> to vector<2x128xf32>
    %29 = arith.addf %27, %28 : vector<2x128xf32>
    %30 = arith.addf %26, %29 : vector<2x128xf32>
    %c0_10 = arith.constant 0 : index
    %c0_11 = arith.constant 0 : index
    %c0_12 = arith.constant 0 : index
    %31 = vector.load %arg5[%c0_10, %c0_11, %c0_12] : memref<1x2x128xf32, #tpu.memory_space<vmem>>, vector<1x2x128xf32>
    %32 = vector.shape_cast %31 : vector<1x2x128xf32> to vector<2x128xf32>
    %33 = vector.shape_cast %30 : vector<2x128xf32> to vector<1x2x128xf32>
    tpu.vector_store %arg5[%c0_10, %c0_11, %c0_12], %33 {strides = array<i32>} : memref<1x2x128xf32, #tpu.memory_space<vmem>>, vector<1x2x128xf32>,
    %c0_13 = arith.constant 0 : index
    %c0_14 = arith.constant 0 : index
    %c0_15 = arith.constant 0 : index
    %34 = vector.load %arg6[%c0_13, %c0_14, %c0_15] : memref<1x2x128xf32, #tpu.memory_space<vmem>>, vector<1x2x128xf32>
    %35 = vector.shape_cast %34 : vector<1x2x128xf32> to vector<2x128xf32>
    %36 = vector.extract_strided_slice %23 {offsets = [0, 0], sizes = [2, 128], strides = [1, 1]} : vector<2x256xf32> to vector<2x128xf32>
    %37 = vector.extract_strided_slice %23 {offsets = [0, 128], sizes = [2, 128], strides = [1, 1]} : vector<2x256xf32> to vector<2x128xf32>
    %38 = arith.addf %36, %37 : vector<2x128xf32>
    %39 = arith.addf %35, %38 : vector<2x128xf32>
    %c0_16 = arith.constant 0 : index
    %c0_17 = arith.constant 0 : index
    %c0_18 = arith.constant 0 : index
    %40 = vector.load %arg6[%c0_16, %c0_17, %c0_18] : memref<1x2x128xf32, #tpu.memory_space<vmem>>, vector<1x2x128xf32>
    %41 = vector.shape_cast %40 : vector<1x2x128xf32> to vector<2x128xf32>
    %42 = vector.shape_cast %39 : vector<2x128xf32> to vector<1x2x128xf32>
    tpu.vector_store %arg6[%c0_16, %c0_17, %c0_18], %42 {strides = array<i32>} : memref<1x2x128xf32, #tpu.memory_space<vmem>>, vector<1x2x128xf32>,
    %c0_19 = arith.constant 0 : index
    %c0_20 = arith.constant 0 : index
    %c0_21 = arith.constant 0 : index
    %43 = vector.load %arg7[%c0_19, %c0_20, %c0_21] : memref<1x2x128xf32, #tpu.memory_space<vmem>>, vector<1x2x128xf32>
    %44 = vector.shape_cast %43 : vector<1x2x128xf32> to vector<2x128xf32>
    %45 = vector.extract_strided_slice %24 {offsets = [0, 0], sizes = [2, 128], strides = [1, 1]} : vector<2x256xf32> to vector<2x128xf32>
    %46 = vector.extract_strided_slice %24 {offsets = [0, 128], sizes = [2, 128], strides = [1, 1]} : vector<2x256xf32> to vector<2x128xf32>
    %47 = arith.addf %45, %46 : vector<2x128xf32>
    %48 = arith.addf %44, %47 : vector<2x128xf32>
    %c0_22 = arith.constant 0 : index
    %c0_23 = arith.constant 0 : index
    %c0_24 = arith.constant 0 : index
    %49 = vector.load %arg7[%c0_22, %c0_23, %c0_24] : memref<1x2x128xf32, #tpu.memory_space<vmem>>, vector<1x2x128xf32>
    %50 = vector.shape_cast %49 : vector<1x2x128xf32> to vector<2x128xf32>
    %51 = vector.shape_cast %48 : vector<2x128xf32> to vector<1x2x128xf32>
    tpu.vector_store %arg7[%c0_22, %c0_23, %c0_24], %51 {strides = array<i32>} : memref<1x2x128xf32, #tpu.memory_space<vmem>>, vector<1x2x128xf32>,
    return
  }
  func.func @transform_0(%arg0: i32, %arg1: i32) -> (i32, i32) {
    %c1_i32 = arith.constant 1 : i32
    %0 = arith.muli %arg0, %c1_i32 : i32
    %1 = arith.addi %0, %arg1 : i32
    %c0_i32 = arith.constant 0 : i32
    %c0_i32_0 = arith.constant 0 : i32
    return %c0_i32, %1 : i32, i32
  }
  func.func @transform_1(%arg0: i32, %arg1: i32) -> (i32, i32) {
    %c1_i32 = arith.constant 1 : i32
    %0 = arith.muli %arg0, %c1_i32 : i32
    %c1_i32_0 = arith.constant 1 : i32
    %1 = arith.addi %c1_i32_0, %0 : i32
    %2 = arith.addi %1, %arg1 : i32
    %c0_i32 = arith.constant 0 : i32
    %c0_i32_1 = arith.constant 0 : i32
    return %c0_i32, %2 : i32, i32
  }
  func.func @transform_2(%arg0: i32, %arg1: i32) -> (i32, i32) {
    %c1_i32 = arith.constant 1 : i32
    %0 = arith.muli %arg0, %c1_i32 : i32
    %1 = arith.addi %0, %arg1 : i32
    %c0_i32 = arith.constant 0 : i32
    %c0_i32_0 = arith.constant 0 : i32
    return %c0_i32, %1 : i32, i32
  }
  func.func @transform_3(%arg0: i32, %arg1: i32) -> (i32, i32, i32) {
    %c0_i32 = arith.constant 0 : i32
    %c0_i32_0 = arith.constant 0 : i32
    %c0_i32_1 = arith.constant 0 : i32
    return %arg0, %c0_i32, %c0_i32_0 : i32, i32, i32
  }
  func.func @transform_4(%arg0: i32, %arg1: i32) -> (i32, i32, i32) {
    %c0_i32 = arith.constant 0 : i32
    %c0_i32_0 = arith.constant 0 : i32
    %c0_i32_1 = arith.constant 0 : i32
    return %arg0, %c0_i32, %c0_i32_0 : i32, i32, i32
  }
  func.func @transform_5(%arg0: i32, %arg1: i32) -> (i32, i32, i32) {
    %c0_i32 = arith.constant 0 : i32
    %c0_i32_0 = arith.constant 0 : i32
    %c0_i32_1 = arith.constant 0 : i32
    return %arg0, %c0_i32, %c0_i32_0 : i32, i32, i32
  }
}

</mosaic_0001>

<bundles_post_ra>
// kernel: tpu_custom_call.1
= control target key start
LH: loop header
LB: loop body
LE: loop exit
PB: predicated region body
PF: predicated region fallthrough
CT: control target
= control target key end

     0   :  { %11 = vsyncpa [#allocation3], 0  ;;  %s418_s0 = inlined_call_operand.hbm [shape: f32[2,512], index: 0, kind: input, shape index: {}]   ;;  %s419_s1 = inlined_call_operand.hbm [shape: f32[2,512], index: 1, kind: input, shape index: {}]   ;;  %s420_s2 = inlined_call_operand.vmem [shape: s32[2,256], index: 2, kind: input, shape index: {}]   ;;  %s421_s3 = inlined_call_operand.hbm [shape: f32[1,2,128], index: 3, kind: output, shape index: {0}]   ;;  %s422_s4 = inlined_call_operand.hbm [shape: f32[1,2,128], index: 4, kind: output, shape index: {1}]   ;;  %s423_s5 = inlined_call_operand.hbm [shape: f32[1,2,128], index: 5, kind: output, shape index: {2}]  }
   0x1   :  { %12 = vsyncpa [#allocation6], 0 }
   0x2   :  { %13 = vsyncpa [#allocation4], 0 }
   0x3   :  { %14 = vsyncpa [#allocation9], 0  ;;  %s338_s20 = scalar_lea.hbm %s419_s1, 64  ;;  %s299_s21 = smov [#allocation2]  }
   0x4   :  { %s25_s22 = sshll.u32 %s299_s21, 4  ;;  %s300_s23 = smov [#allocation5]   ;;  %s26_s22 = int_to_ptr.vmem [resolvable:$true] %s25_s22 }
   0x5   :  { %s40_s24 = sshll.u32 %s300_s23, 4  ;;  %s178_s27 = scalar_lea.hbm %s418_s0, 64  ;;  %s41_s24 = int_to_ptr.vmem [resolvable:$true] %s40_s24 }
   0x6   :  { %p179_p0 = scmp.ne.s32.totalorder %s418_s0, %s178_s27  ;;  %s180_s7 = scalar_lea.hbm %s418_s0, 128 }
   0x7   :  { %p181_p1 = scmp.lt.u32.totalorder %s180_s7, %s178_s27  ;;  %p182_p2 = scmp.lt.u32.totalorder %s178_s27, %s418_s0 }
   0x9   :  { %p183_p3 = por %p182_p2, %p181_p1 }
   0xb   :  { %p184_p4 = pnand %p183_p3, %p179_p0 }
   0xd   :  { %187 = shalt.err (!%p184_p4)
}
   0xe   :  { %s188_s10 = scalar_lea.vmem %s26_s22, 64  ;;  %p193_p6 = scmp.lt.s32.totalorder %s26_s22, %s26_s22 }
   0xf   :  { %p189_p5 = scmp.ne.s32.totalorder %s26_s22, %s188_s10  ;;  %p194_p7 = scmp.lt.s32.totalorder %s188_s10, %s188_s10 }
  0x11   :  { %p195_p8 = por %p194_p7, %p193_p6 }
  0x13   :  { %p196_p9 = pnand %p195_p8, %p189_p5 }
  0x15   :  { %199 = shalt.err (!%p196_p9)
}
  0x16   :  { %28 = dma.hbm_to_vmem [thread:$0]  %s418_s0, 64, %s26_s22, [#allocation3]  }
  0x17   :  { %s224_s15 = scalar_lea.hbm %s419_s1, 128  ;;  %p203_p11 = scmp.lt.u32.totalorder %s338_s20, %s419_s1 }
  0x18   :  { %p201_p10 = scmp.ne.s32.totalorder %s338_s20, %s224_s15  ;;  %p204_p12 = scmp.lt.u32.totalorder %s224_s15, %s224_s15 }
  0x19   :  { %p206_p0 = scmp.lt.u32.totalorder %s224_s15, %s338_s20 }
  0x1a   :  { %p205_p13 = por %p204_p12, %p203_p11 }
  0x1c   :  { %p207_p1 = por %p206_p0, %p205_p13 }
  0x1e   :  { %p208_p2 = pnand %p207_p1, %p201_p10 }
  0x20   :  { %211 = shalt.err (!%p208_p2)
}
  0x21   :  { %s212_s18 = scalar_lea.vmem %s41_s24, 64  ;;  %p217_p4 = scmp.lt.s32.totalorder %s41_s24, %s41_s24 }
  0x22   :  { %p213_p3 = scmp.ne.s32.totalorder %s41_s24, %s212_s18  ;;  %p218_p5 = scmp.lt.s32.totalorder %s212_s18, %s212_s18 }
  0x24   :  { %p219_p6 = por %p218_p5, %p217_p4 }
  0x26   :  { %p220_p7 = pnand %p219_p6, %p213_p3 }
  0x28   :  { %223 = shalt.err (!%p220_p7)
}
  0x29   :  { %43 = dma.hbm_to_vmem [thread:$0]  %s338_s20, 64, %s41_s24, [#allocation6]  }
  0x2a   :  { %291 = dma.done.wait [#allocation3], 64  }
  0x2b   :  { %292 = vsyncadd [#allocation3], 4294967232 }
  0x2c   :  { %293 = dma.done.wait [#allocation6], 64  }
  0x2d   :  { %294 = vsyncadd [#allocation6], 4294967232  ;;  %v301_v0 = vmov 0.0   ;;  %v86_v1 = vld [vmem:[#allocation2] sm:$0xf]  ;;  %s302_s19 = smov [#allocation8]  }
  0x2e   :  { %84 = vst [vmem:[#allocation8] sm:$0x3] %v301_v0  ;;  %83 = vst [vmem:[#allocation7] sm:$0x3] %v301_v0  ;;  %v87_v2 = vld [vmem:[#allocation5] sm:$0xf] }
  0x2f   :  { %85 = vst [vmem:[#allocation10] sm:$0x3] %v301_v0  ;;  %v88_v3 = vld [vmem:[%s420_s2] sm:$0xf]  ;;  %v90_v4 = vsub.f32 %v87_v2, %v86_v1  ;;  %s136_s20 = sshll.u32 %s302_s19, 4  ;;  %s303_s2 = smov [#allocation10]   ;;  %s137_s20 = int_to_ptr.vmem [resolvable:$true] %s136_s20 }
  0x30   :  { %v89_v5 = vcvt.s32.f32 %v88_v3  ;;  %s146_s21 = sshll.u32 %s303_s2, 4  ;;  %s304_s22 = smov [#allocation7]   ;;  %s368_s21 = int_to_ptr.vmem [resolvable:$true] %s146_s21 }
  0x31   :  { %v91_v6 = vmul.f32 0.5, %v90_v4  ;;  %s126_s23 = sshll.u32 %s304_s22, 4  ;;  %s225_s24 = scalar_lea.vmem %s137_s20, 32  ;;  %s370_s23 = int_to_ptr.vmem [resolvable:$true] %s126_s23 }
  0x32   :  { %v115_v7 = vrot.slane %v89_v5, 2  ;;  %p226_p8 = scmp.ne.s32.totalorder %s137_s20, %s225_s24  ;;  %p230_p9 = scmp.lt.s32.totalorder %s137_s20, %s137_s20 }
  0x33   :  { %176 = vtanh.f32 %v91_v6  ;;  %p231_p10 = scmp.lt.s32.totalorder %s225_s24, %s225_s24 }
  0x34   :  { %v117_v9 = vadd.f32 %v115_v7, %v89_v5 }
  0x35   :  { %v106_v16 = vld [vmem:[#allocation8] sm:$0x3]  ;;  %v99_v19 = vld [vmem:[#allocation7] sm:$0x3]  ;;  %p232_p11 = por %p231_p10, %p230_p9 }
  0x36   :  { %v113_v8 = vld [vmem:[#allocation10] sm:$0x3] }
  0x37   :  { %v118_v10 = vadd.f32 %v117_v9, %v113_v8  ;;  %p233_p12 = pnand %p232_p11, %p226_p8 }
  0x39   :  { %119 = vst [vmem:[#allocation10] sm:$0x3] %v118_v10 }
  0x3d   :  { %v177_v11 = vpop.eup %176 }
  0x3e   :  { %v93_v12 = vadd.f32 1.0, %v177_v11 }
  0x40   :  { %v94_v13 = vmul.f32 0.5, %v93_v12 }
  0x42   :  { %v108_v14 = vrot.slane %v94_v13, 2  ;;  %v95_v15 = vmul.f32 %v94_v13, %v89_v5 }
  0x44   :  { %v110_v17 = vadd.f32 %v108_v14, %v94_v13  ;;  %v101_v18 = vrot.slane %v95_v15, 2 }
  0x46   :  { %v111_v20 = vadd.f32 %v110_v17, %v106_v16  ;;  %v103_v21 = vadd.f32 %v101_v18, %v95_v15 }
  0x48   :  { %112 = vst [vmem:[#allocation8] sm:$0x3] %v111_v20  ;;  %v104_v22 = vadd.f32 %v103_v21, %v99_v19 }
  0x49   :  { %236 = shalt.err (!%p233_p12)
}
  0x4a   :  { %s237_s27 = scalar_lea.hbm %s422_s4, 32 }
  0x4b   :  { %p238_p13 = scmp.ne.s32.totalorder %s422_s4, %s237_s27  ;;  %p241_p0 = scmp.lt.u32.totalorder %s237_s27, %s422_s4 }
  0x4d   :  { %p243_p1 = pnand %p241_p0, %p238_p13 }
  0x4f   :  { %246 = shalt.err (!%p243_p1)
}
  0x50   :  { %139 = dma.vmem_to_hbm [thread:$0]  %s137_s20, 32, %s422_s4, [#allocation9]   ;;  %105 = vst [vmem:[#allocation7] sm:$0x3] %v104_v22 }
  0x51   :  { %s247_s9 = scalar_lea.vmem %s368_s21, 32  ;;  %p252_p3 = scmp.lt.s32.totalorder %s368_s21, %s368_s21 }
  0x52   :  { %p248_p2 = scmp.ne.s32.totalorder %s368_s21, %s247_s9  ;;  %p253_p4 = scmp.lt.s32.totalorder %s247_s9, %s247_s9 }
  0x54   :  { %p254_p5 = por %p253_p4, %p252_p3 }
  0x56   :  { %p255_p6 = pnand %p254_p5, %p248_p2 }
  0x58   :  { %258 = shalt.err (!%p255_p6)
}
  0x59   :  { %s259_s12 = scalar_lea.hbm %s423_s5, 32 }
  0x5a   :  { %p260_p7 = scmp.ne.s32.totalorder %s423_s5, %s259_s12  ;;  %p263_p8 = scmp.lt.u32.totalorder %s259_s12, %s423_s5 }
  0x5c   :  { %p265_p9 = pnand %p263_p8, %p260_p7 }
  0x5e   :  { %268 = shalt.err (!%p265_p9)
}
  0x5f   :  { %149 = dma.vmem_to_hbm [thread:$0]  %s368_s21, 32, %s423_s5, [#allocation9]  }
  0x60   :  { %s269_s18 = scalar_lea.vmem %s370_s23, 32  ;;  %p274_p11 = scmp.lt.s32.totalorder %s370_s23, %s370_s23 }
  0x61   :  { %p270_p10 = scmp.ne.s32.totalorder %s370_s23, %s269_s18  ;;  %p275_p12 = scmp.lt.s32.totalorder %s269_s18, %s269_s18 }
  0x63   :  { %p276_p13 = por %p275_p12, %p274_p11 }
  0x65   :  { %p277_p0 = pnand %p276_p13, %p270_p10 }
  0x67   :  { %280 = shalt.err (!%p277_p0)
}
  0x68   :  { %s281_s19 = scalar_lea.hbm %s421_s3, 32 }
  0x69   :  { %p282_p1 = scmp.ne.s32.totalorder %s421_s3, %s281_s19  ;;  %p285_p2 = scmp.lt.u32.totalorder %s281_s19, %s421_s3 }
  0x6b   :  { %p287_p3 = pnand %p285_p2, %p282_p1 }
  0x6d   :  { %290 = shalt.err (!%p287_p3)
}
  0x6e   :  { %129 = dma.vmem_to_hbm [thread:$0]  %s370_s23, 32, %s421_s3, [#allocation4]  }
  0x6f   :  { %295 = dma.done.wait [#allocation4], 32  }
  0x70   :  { %296 = vsyncadd [#allocation4], 4294967264 }
  0x71   :  { %297 = dma.done.wait [#allocation9], 64  }
  0x72   :  { %298 = vsyncadd [#allocation9], 4294967232 }
  0x73   :  { %159 = vsyncpa [#allocation3], 1 }
  0x74   :  { %160 = vsyncpa [#allocation6], 1 }
  0x75   :  { %161 = vsyncpa [#allocation4], 1 }
  0x76   :  { %162 = vsyncpa [#allocation9], 1 }

</bundles_post_ra>
